<compile_context>
chip_gen: v6e
topology: v6e:2x2x1
jax: 0.10.0
libtpu: 0.0.40
codegen_flags: <defaults>
</compile_context>

<pallas_src>
import functools

import jax
import jax.numpy as jnp
from jax import lax
from jax.experimental import pallas as pl
from jax.experimental.pallas import tpu as pltpu

EPS = 1e-5           # nn.BatchNorm2d default eps
_MAX_TILE = 8192     # lanes per pixel tile (review: 2048..8192)
_LANE = 128


def _compiler_params():
    # Both grid axes "parallel": every (image, tile) step writes disjoint output
    # blocks, so v7x shards the grid over its 2 TensorCores; v5e/v6e are unaffected.
    return pltpu.CompilerParams(
        dimension_semantics=("parallel", "parallel"),
        vmem_limit_bytes=48 * 1024 * 1024,
    )


def _pick_tile(p):
    """Largest lane tile <= _MAX_TILE: whole axis if it fits, else a 128-multiple
    divisor of p, else fall back to ragged tiles (masked in-kernel)."""
    if p <= _MAX_TILE:
        return p
    for t in range(_MAX_TILE, _LANE - 1, -_LANE):
        if p % t == 0:
            return t
    return _MAX_TILE


def _small_matmul(w, x):
    """(Co, Ci) @ (Ci, P) as an unrolled VPU multiply-accumulate on lane-dense tiles.

    At Cin=Cmid=Cout=4 the MXU would be <1% utilized, so stay on the VPU.
    # TODO(synk): switch to jnp.dot(..., preferred_element_type=jnp.float32) once
    # channels reach ~32-64 (crossover earlier on v5e's 4x128^2 MXU than v6e/v7x).
    """
    _, ci = w.shape
    acc = w[:, 0:1] * x[0:1, :]
    for k in range(1, ci):
        acc = acc + w[:, k:k + 1] * x[k:k + 1, :]
    return acc


def _lane_mask(tile_idx, tile, valid):
    pos = tile_idx * tile + lax.broadcasted_iota(jnp.int32, (1, tile), 1)
    return pos < valid


def _bn1_stats_kernel(x_ref, w1_ref, mom_ref, *, valid, tile, ragged):
    """Pass 1: per-tile partial (sum, sumsq) of z = conv1(x) for BN1 batch stats.

    x_ref: (Cin, T) lane-dense pixels of one image; mom_ref: (Cmid, 2)."""
    z = _small_matmul(w1_ref[...], x_ref[...])
    if ragged:  # last tile of the pixel axis is padded -> mask its contribution
        z = jnp.where(_lane_mask(pl.program_id(1), tile, valid), z, 0.0)
    s = jnp.sum(z, axis=1, keepdims=True)
    ss = jnp.sum(z * z, axis=1, keepdims=True)
    mom_ref[...] = jnp.concatenate([s, ss], axis=1)


def _main_kernel(xc_ref, w1_ref, a1_ref, w2_ref, y_ref, mom_ref, *,
                 cin, valid, tile, ragged):
    """Pass 2: conv1 -> BN1 affine -> ReLU -> 2x2 avg-pool -> conv2 on one tile,
    plus per-tile partial (sum, sumsq) of y2 for BN2 batch stats.

    xc_ref: (4*Cin, T) -- the four pooling corners packed along sublanes, with the
            kept (pooled + strided) pixel axis lane-dense.
    y_ref:  (Cout, T)  -- un-normalized conv2 output (BN2 affine applied in pass 3).
    """
    w1 = w1_ref[...]
    scale1 = a1_ref[:, 0:1]
    shift1 = a1_ref[:, 1:2]
    xb = xc_ref[...]
    hsum = None
    for k in range(4):                                    # the 4 pooling corners
        z = _small_matmul(w1, xb[k * cin:(k + 1) * cin, :])
        h = jnp.maximum(z * scale1 + shift1, 0.0)         # BN1 + ReLU
        hsum = h if hsum is None else hsum + h
    pooled = hsum * 0.25                                  # AvgPool2d(2, 2)
    y2 = _small_matmul(w2_ref[...], pooled)               # conv2 (stride is in xc)
    y_ref[...] = y2                                       # ragged OOB stores dropped
    if ragged:
        y2 = jnp.where(_lane_mask(pl.program_id(1), tile, valid), y2, 0.0)
    mom_ref[...] = jnp.concatenate([jnp.sum(y2, axis=1, keepdims=True),
                                    jnp.sum(y2 * y2, axis=1, keepdims=True)], axis=1)


def _bn2_apply_kernel(y_ref, a2_ref, o_ref):
    """Pass 3: apply the folded BN2 affine to the conv2 output tile."""
    o_ref[...] = y_ref[...] * a2_ref[:, 0:1] + a2_ref[:, 1:2]


def _finalize_bn(mom, counts, total_n, gamma, beta):
    """Fold training-mode BatchNorm (biased variance, eps=1e-5) into (scale, shift).

    mom: (N, nT, C, 2) per-tile [sum, sumsq]; merged with Chan's parallel-variance
    formula so the E[y^2]-mean^2 step only happens within a single tile."""
    s = mom[..., 0]                                        # (N, nT, C)
    ss = mom[..., 1]
    cnt = counts[None, :, None]
    mean_g = s / cnt
    m2_g = ss - s * mean_g                                 # per-tile sum sq. deviations
    mean = jnp.sum(s, axis=(0, 1)) / total_n               # (C,)
    m2 = jnp.sum(m2_g, axis=(0, 1)) + jnp.sum(cnt * (mean_g - mean) ** 2, axis=(0, 1))
    var = jnp.maximum(m2 / total_n, 0.0)                   # biased variance
    scale = gamma.reshape(-1).astype(jnp.float32) * lax.rsqrt(var + EPS)
    shift = beta.reshape(-1).astype(jnp.float32) - mean * scale
    return jnp.stack([scale, shift], axis=1)               # (C, 2)


def ibpool_forward(x_nchw, w1, g1, b1, w2, g2, b2, stride=1):
    """IBPool forward. x: (N, Cin, H, W) -> (N, Cout, Hf, Wf), all f32.

    w1: (Cmid, Cin), w2: (Cout, Cmid)  (1x1 conv weights, PyTorch orientation).
    g*/b*: (C,) BatchNorm affine parameters.
    """
    N, Cin, H, W = x_nchw.shape
    Cmid = w1.shape[0]
    Cout = w2.shape[0]
    Ho, Wo = H // 2, W // 2                   # AvgPool2d(2,2) floor behaviour
    Hf = (Ho - 1) // stride + 1               # conv2 1x1 stride == subsample
    Wf = (Wo - 1) // stride + 1
    P1 = H * W
    P2 = Hf * Wf

    x = x_nchw.astype(jnp.float32)
    w1f = w1.astype(jnp.float32)
    w2f = w2.astype(jnp.float32)

    t1 = _pick_tile(P1)
    n_t1 = pl.cdiv(P1, t1)
    t2 = _pick_tile(P2)
    n_t2 = pl.cdiv(P2, t2)

    # ---- Pass 1: BN1 batch statistics of conv1(x) over ALL pixels -------------
    # Reads x through a free (N, Cin, H*W) view: no wrapper copy, lane-dense tiles,
    # double-buffered by the BlockSpec pipeline.
    x_flat = x.reshape(N, Cin, P1)
    mom1 = pl.pallas_call(
        functools.partial(_bn1_stats_kernel, valid=P1, tile=t1,
                          ragged=(P1 % t1 != 0)),
        grid=(N, n_t1),
        in_specs=[pl.BlockSpec((None, Cin, t1), lambda n, t: (n, 0, t)),
                  pl.BlockSpec((Cmid, Cin), lambda n, t: (0, 0))],
        out_specs=pl.BlockSpec((None, None, Cmid, 2), lambda n, t: (n, t, 0, 0)),
        out_shape=jax.ShapeDtypeStruct((N, n_t1, Cmid, 2), jnp.float32),
        compiler_params=_compiler_params(),
    )(x_flat, w1f)

    counts1 = jnp.asarray([t1] * (n_t1 - 1) + [P1 - (n_t1 - 1) * t1], jnp.float32)
    a1 = _finalize_bn(mom1, counts1, float(N * P1), g1, b1)        # (Cmid, 2)

    # ---- Corner-packed view of the kept pixels for the pooled + strided path ---
    # 4 corners x Cin channels -> (4*Cin, P2): full sublane occupancy, lane-dense.
    step = 2 * stride

    def corner(di, dj):
        return x[:, :, di:di + step * (Hf - 1) + 1:step,
                       dj:dj + step * (Wf - 1) + 1:step]           # (N, Cin, Hf, Wf)

    xc = jnp.stack([corner(0, 0), corner(0, 1), corner(1, 0), corner(1, 1)],
                   axis=1).reshape(N, 4 * Cin, P2)

    # ---- Pass 2: BN1 apply + ReLU + pool + conv2, and BN2 partial stats --------
    y2, mom2 = pl.pallas_call(
        functools.partial(_main_kernel, cin=Cin, valid=P2, tile=t2,
                          ragged=(P2 % t2 != 0)),
        grid=(N, n_t2),
        in_specs=[pl.BlockSpec((None, 4 * Cin, t2), lambda n, t: (n, 0, t)),
                  pl.BlockSpec((Cmid, Cin), lambda n, t: (0, 0)),
                  pl.BlockSpec((Cmid, 2), lambda n, t: (0, 0)),
                  pl.BlockSpec((Cout, Cmid), lambda n, t: (0, 0))],
        out_specs=(pl.BlockSpec((None, Cout, t2), lambda n, t: (n, 0, t)),
                   pl.BlockSpec((None, None, Cout, 2), lambda n, t: (n, t, 0, 0))),
        out_shape=(jax.ShapeDtypeStruct((N, Cout, P2), jnp.float32),
                   jax.ShapeDtypeStruct((N, n_t2, Cout, 2), jnp.float32)),
        compiler_params=_compiler_params(),
    )(xc, w1f, a1, w2f)

    counts2 = jnp.asarray([t2] * (n_t2 - 1) + [P2 - (n_t2 - 1) * t2], jnp.float32)
    a2 = _finalize_bn(mom2, counts2, float(N * P2), g2, b2)        # (Cout, 2)

    # ---- Pass 3: apply the folded BN2 affine -----------------------------------
    out = pl.pallas_call(
        _bn2_apply_kernel,
        grid=(N, n_t2),
        in_specs=[pl.BlockSpec((None, Cout, t2), lambda n, t: (n, 0, t)),
                  pl.BlockSpec((Cout, 2), lambda n, t: (0, 0))],
        out_specs=pl.BlockSpec((None, Cout, t2), lambda n, t: (n, 0, t)),
        out_shape=jax.ShapeDtypeStruct((N, Cout, P2), jnp.float32),
        compiler_params=_compiler_params(),
    )(y2, a2)

    return out.reshape(N, Cout, Hf, Wf)      # free reshape back to NCHW


def _reference_forward(x, w1, g1, b1, w2, g2, b2, stride):
    """Pure-jnp reference of the PyTorch module (training-mode BN)."""
    def bn(y, g, b):
        mean = y.mean(axis=(0, 2, 3))
        var = y.var(axis=(0, 2, 3))
        scale = g * lax.rsqrt(var + EPS)
        shift = b - mean * scale
        return y * scale[None, :, None, None] + shift[None, :, None, None]

    z = jnp.einsum('oc,nchw->nohw', w1, x)
    h = jax.nn.relu(bn(z, g1, b1))
    n, c, hh, ww = h.shape
    ho, wo = hh // 2, ww // 2
    p = h[:, :, :2 * ho, :2 * wo].reshape(n, c, ho, 2, wo, 2).mean(axis=(3, 5))
    p = p[:, :, ::stride, ::stride]
    y = jnp.einsum('oc,nchw->nohw', w2, p)
    return bn(y, g2, b2)


if __name__ == "__main__":
    # IBPool(in_planes=4, out_planes=4, stride=1, expansion=1)
    in_planes, out_planes, expansion, stride = 4, 4, 1, 1
    mid_planes = int(out_planes * expansion)

    key = jax.random.PRNGKey(0)
    kx, kw1, kw2 = jax.random.split(key, 3)

    N, H, W = 2, 16, 16
    x = jax.random.normal(kx, (N, in_planes, H, W), dtype=jnp.float32)

    # 1x1 conv weights in PyTorch (Cout, Cin) orientation; BN affine at defaults.
    w1 = jax.random.normal(kw1, (mid_planes, in_planes), dtype=jnp.float32) * 0.1
    w2 = jax.random.normal(kw2, (out_planes, mid_planes), dtype=jnp.float32) * 0.1
    g1 = jnp.ones((mid_planes,), jnp.float32)
    b1 = jnp.zeros((mid_planes,), jnp.float32)
    g2 = jnp.ones((out_planes,), jnp.float32)
    b2 = jnp.zeros((out_planes,), jnp.float32)

    fwd = jax.jit(ibpool_forward, static_argnames=("stride",))
    y = fwd(x, w1, g1, b1, w2, g2, b2, stride=stride)
    jax.block_until_ready(y)
    assert y.shape == (N, out_planes, H // 2, W // 2), y.shape

    y_ref = _reference_forward(x, w1, g1, b1, w2, g2, b2, stride)
    err = float(jnp.max(jnp.abs(y - y_ref)))
    assert err < 1e-3, f"max abs err vs reference: {err}"
    print("KERNEL_OK")
</pallas_src>

<mosaic_0001>
module attributes {stable_mosaic.version = 11 : i64} {
  func.func @_main_kernel(%arg0: i32, %arg1: i32, %arg2: memref<1x16x64xf32, #tpu.memory_space<vmem>>, %arg3: memref<4x4xf32, #tpu.memory_space<vmem>>, %arg4: memref<4x2xf32, #tpu.memory_space<vmem>>, %arg5: memref<4x4xf32, #tpu.memory_space<vmem>>, %arg6: memref<1x4x64xf32, #tpu.memory_space<vmem>>, %arg7: memref<1x1x4x2xf32, #tpu.memory_space<vmem>>) attributes {dimension_semantics = [#tpu.dimension_semantics<parallel>, #tpu.dimension_semantics<parallel>], iteration_bounds = array<i64: 2, 1>, scalar_prefetch = 0 : i64, scratch_operands = 0 : i64, tpu.core_type = #tpu.core_type<tc>, window_params = [{transform_indices = @transform_0, window_bounds = array<i64: 1, 16, 64>}, {pipeline_mode = #tpu.pipeline_mode<synchronous>, transform_indices = @transform_1, window_bounds = array<i64: 4, 4>}, {pipeline_mode = #tpu.pipeline_mode<synchronous>, transform_indices = @transform_2, window_bounds = array<i64: 4, 2>}, {pipeline_mode = #tpu.pipeline_mode<synchronous>, transform_indices = @transform_3, window_bounds = array<i64: 4, 4>}, {transform_indices = @transform_4, window_bounds = array<i64: 1, 4, 64>}, {transform_indices = @transform_5, window_bounds = array<i64: 1, 1, 4, 2>}]} {
    %c0 = arith.constant 0 : index
    %c0_0 = arith.constant 0 : index
    %0 = vector.load %arg3[%c0, %c0_0] : memref<4x4xf32, #tpu.memory_space<vmem>>, vector<4x4xf32>
    %c0_1 = arith.constant 0 : index
    %c0_2 = arith.constant 0 : index
    %1 = vector.load %arg4[%c0_1, %c0_2] : memref<4x2xf32, #tpu.memory_space<vmem>>, vector<4x1xf32>
    %c0_3 = arith.constant 0 : index
    %c1 = arith.constant 1 : index
    %2 = vector.load %arg4[%c0_3, %c1] : memref<4x2xf32, #tpu.memory_space<vmem>>, vector<4x1xf32>
    %c0_4 = arith.constant 0 : index
    %c0_5 = arith.constant 0 : index
    %c0_6 = arith.constant 0 : index
    %3 = vector.load %arg2[%c0_4, %c0_5, %c0_6] : memref<1x16x64xf32, #tpu.memory_space<vmem>>, vector<1x16x64xf32>
    %4 = vector.shape_cast %3 : vector<1x16x64xf32> to vector<16x64xf32>
    %5 = vector.extract_strided_slice %4 {offsets = [0, 0], sizes = [4, 64], strides = [1, 1]} : vector<16x64xf32> to vector<4x64xf32>
    %6 = vector.extract_strided_slice %0 {offsets = [0, 0], sizes = [4, 1], strides = [1, 1]} : vector<4x4xf32> to vector<4x1xf32>
    %7 = vector.extract_strided_slice %5 {offsets = [0, 0], sizes = [1, 64], strides = [1, 1]} : vector<4x64xf32> to vector<1x64xf32>
    %8 = vector.broadcast %6 : vector<4x1xf32> to vector<4x64xf32>
    %9 = vector.broadcast %7 : vector<1x64xf32> to vector<4x64xf32>
    %10 = arith.mulf %8, %9 : vector<4x64xf32>
    %11 = vector.extract_strided_slice %0 {offsets = [0, 1], sizes = [4, 1], strides = [1, 1]} : vector<4x4xf32> to vector<4x1xf32>
    %12 = vector.extract_strided_slice %5 {offsets = [1, 0], sizes = [1, 64], strides = [1, 1]} : vector<4x64xf32> to vector<1x64xf32>
    %13 = vector.broadcast %11 : vector<4x1xf32> to vector<4x64xf32>
    %14 = vector.broadcast %12 : vector<1x64xf32> to vector<4x64xf32>
    %15 = arith.mulf %13, %14 : vector<4x64xf32>
    %16 = arith.addf %10, %15 : vector<4x64xf32>
    %17 = vector.extract_strided_slice %0 {offsets = [0, 2], sizes = [4, 1], strides = [1, 1]} : vector<4x4xf32> to vector<4x1xf32>
    %18 = vector.extract_strided_slice %5 {offsets = [2, 0], sizes = [1, 64], strides = [1, 1]} : vector<4x64xf32> to vector<1x64xf32>
    %19 = vector.broadcast %17 : vector<4x1xf32> to vector<4x64xf32>
    %20 = vector.broadcast %18 : vector<1x64xf32> to vector<4x64xf32>
    %21 = arith.mulf %19, %20 : vector<4x64xf32>
    %22 = arith.addf %16, %21 : vector<4x64xf32>
    %23 = vector.extract_strided_slice %0 {offsets = [0, 3], sizes = [4, 1], strides = [1, 1]} : vector<4x4xf32> to vector<4x1xf32>
    %24 = vector.extract_strided_slice %5 {offsets = [3, 0], sizes = [1, 64], strides = [1, 1]} : vector<4x64xf32> to vector<1x64xf32>
    %25 = vector.broadcast %23 : vector<4x1xf32> to vector<4x64xf32>
    %26 = vector.broadcast %24 : vector<1x64xf32> to vector<4x64xf32>
    %27 = arith.mulf %25, %26 : vector<4x64xf32>
    %28 = arith.addf %22, %27 : vector<4x64xf32>
    %29 = vector.broadcast %1 : vector<4x1xf32> to vector<4x64xf32>
    %30 = arith.mulf %28, %29 : vector<4x64xf32>
    %31 = vector.broadcast %2 : vector<4x1xf32> to vector<4x64xf32>
    %32 = arith.addf %30, %31 : vector<4x64xf32>
    %cst = arith.constant 0.000000e+00 : f32
    %33 = vector.broadcast %cst : f32 to vector<4x64xf32>
    %34 = arith.maximumf %32, %33 : vector<4x64xf32>
    %35 = vector.extract_strided_slice %4 {offsets = [4, 0], sizes = [4, 64], strides = [1, 1]} : vector<16x64xf32> to vector<4x64xf32>
    %36 = vector.extract_strided_slice %0 {offsets = [0, 0], sizes = [4, 1], strides = [1, 1]} : vector<4x4xf32> to vector<4x1xf32>
    %37 = vector.extract_strided_slice %35 {offsets = [0, 0], sizes = [1, 64], strides = [1, 1]} : vector<4x64xf32> to vector<1x64xf32>
    %38 = vector.broadcast %36 : vector<4x1xf32> to vector<4x64xf32>
    %39 = vector.broadcast %37 : vector<1x64xf32> to vector<4x64xf32>
    %40 = arith.mulf %38, %39 : vector<4x64xf32>
    %41 = vector.extract_strided_slice %0 {offsets = [0, 1], sizes = [4, 1], strides = [1, 1]} : vector<4x4xf32> to vector<4x1xf32>
    %42 = vector.extract_strided_slice %35 {offsets = [1, 0], sizes = [1, 64], strides = [1, 1]} : vector<4x64xf32> to vector<1x64xf32>
    %43 = vector.broadcast %41 : vector<4x1xf32> to vector<4x64xf32>
    %44 = vector.broadcast %42 : vector<1x64xf32> to vector<4x64xf32>
    %45 = arith.mulf %43, %44 : vector<4x64xf32>
    %46 = arith.addf %40, %45 : vector<4x64xf32>
    %47 = vector.extract_strided_slice %0 {offsets = [0, 2], sizes = [4, 1], strides = [1, 1]} : vector<4x4xf32> to vector<4x1xf32>
    %48 = vector.extract_strided_slice %35 {offsets = [2, 0], sizes = [1, 64], strides = [1, 1]} : vector<4x64xf32> to vector<1x64xf32>
    %49 = vector.broadcast %47 : vector<4x1xf32> to vector<4x64xf32>
    %50 = vector.broadcast %48 : vector<1x64xf32> to vector<4x64xf32>
    %51 = arith.mulf %49, %50 : vector<4x64xf32>
    %52 = arith.addf %46, %51 : vector<4x64xf32>
    %53 = vector.extract_strided_slice %0 {offsets = [0, 3], sizes = [4, 1], strides = [1, 1]} : vector<4x4xf32> to vector<4x1xf32>
    %54 = vector.extract_strided_slice %35 {offsets = [3, 0], sizes = [1, 64], strides = [1, 1]} : vector<4x64xf32> to vector<1x64xf32>
    %55 = vector.broadcast %53 : vector<4x1xf32> to vector<4x64xf32>
    %56 = vector.broadcast %54 : vector<1x64xf32> to vector<4x64xf32>
    %57 = arith.mulf %55, %56 : vector<4x64xf32>
    %58 = arith.addf %52, %57 : vector<4x64xf32>
    %59 = vector.broadcast %1 : vector<4x1xf32> to vector<4x64xf32>
    %60 = arith.mulf %58, %59 : vector<4x64xf32>
    %61 = vector.broadcast %2 : vector<4x1xf32> to vector<4x64xf32>
    %62 = arith.addf %60, %61 : vector<4x64xf32>
    %cst_7 = arith.constant 0.000000e+00 : f32
    %63 = vector.broadcast %cst_7 : f32 to vector<4x64xf32>
    %64 = arith.maximumf %62, %63 : vector<4x64xf32>
    %65 = arith.addf %34, %64 : vector<4x64xf32>
    %66 = vector.extract_strided_slice %4 {offsets = [8, 0], sizes = [4, 64], strides = [1, 1]} : vector<16x64xf32> to vector<4x64xf32>
    %67 = vector.extract_strided_slice %0 {offsets = [0, 0], sizes = [4, 1], strides = [1, 1]} : vector<4x4xf32> to vector<4x1xf32>
    %68 = vector.extract_strided_slice %66 {offsets = [0, 0], sizes = [1, 64], strides = [1, 1]} : vector<4x64xf32> to vector<1x64xf32>
    %69 = vector.broadcast %67 : vector<4x1xf32> to vector<4x64xf32>
    %70 = vector.broadcast %68 : vector<1x64xf32> to vector<4x64xf32>
    %71 = arith.mulf %69, %70 : vector<4x64xf32>
    %72 = vector.extract_strided_slice %0 {offsets = [0, 1], sizes = [4, 1], strides = [1, 1]} : vector<4x4xf32> to vector<4x1xf32>
    %73 = vector.extract_strided_slice %66 {offsets = [1, 0], sizes = [1, 64], strides = [1, 1]} : vector<4x64xf32> to vector<1x64xf32>
    %74 = vector.broadcast %72 : vector<4x1xf32> to vector<4x64xf32>
    %75 = vector.broadcast %73 : vector<1x64xf32> to vector<4x64xf32>
    %76 = arith.mulf %74, %75 : vector<4x64xf32>
    %77 = arith.addf %71, %76 : vector<4x64xf32>
    %78 = vector.extract_strided_slice %0 {offsets = [0, 2], sizes = [4, 1], strides = [1, 1]} : vector<4x4xf32> to vector<4x1xf32>
    %79 = vector.extract_strided_slice %66 {offsets = [2, 0], sizes = [1, 64], strides = [1, 1]} : vector<4x64xf32> to vector<1x64xf32>
    %80 = vector.broadcast %78 : vector<4x1xf32> to vector<4x64xf32>
    %81 = vector.broadcast %79 : vector<1x64xf32> to vector<4x64xf32>
    %82 = arith.mulf %80, %81 : vector<4x64xf32>
    %83 = arith.addf %77, %82 : vector<4x64xf32>
    %84 = vector.extract_strided_slice %0 {offsets = [0, 3], sizes = [4, 1], strides = [1, 1]} : vector<4x4xf32> to vector<4x1xf32>
    %85 = vector.extract_strided_slice %66 {offsets = [3, 0], sizes = [1, 64], strides = [1, 1]} : vector<4x64xf32> to vector<1x64xf32>
    %86 = vector.broadcast %84 : vector<4x1xf32> to vector<4x64xf32>
    %87 = vector.broadcast %85 : vector<1x64xf32> to vector<4x64xf32>
    %88 = arith.mulf %86, %87 : vector<4x64xf32>
    %89 = arith.addf %83, %88 : vector<4x64xf32>
    %90 = vector.broadcast %1 : vector<4x1xf32> to vector<4x64xf32>
    %91 = arith.mulf %89, %90 : vector<4x64xf32>
    %92 = vector.broadcast %2 : vector<4x1xf32> to vector<4x64xf32>
    %93 = arith.addf %91, %92 : vector<4x64xf32>
    %cst_8 = arith.constant 0.000000e+00 : f32
    %94 = vector.broadcast %cst_8 : f32 to vector<4x64xf32>
    %95 = arith.maximumf %93, %94 : vector<4x64xf32>
    %96 = arith.addf %65, %95 : vector<4x64xf32>
    %97 = vector.extract_strided_slice %4 {offsets = [12, 0], sizes = [4, 64], strides = [1, 1]} : vector<16x64xf32> to vector<4x64xf32>
    %98 = vector.extract_strided_slice %0 {offsets = [0, 0], sizes = [4, 1], strides = [1, 1]} : vector<4x4xf32> to vector<4x1xf32>
    %99 = vector.extract_strided_slice %97 {offsets = [0, 0], sizes = [1, 64], strides = [1, 1]} : vector<4x64xf32> to vector<1x64xf32>
    %100 = vector.broadcast %98 : vector<4x1xf32> to vector<4x64xf32>
    %101 = vector.broadcast %99 : vector<1x64xf32> to vector<4x64xf32>
    %102 = arith.mulf %100, %101 : vector<4x64xf32>
    %103 = vector.extract_strided_slice %0 {offsets = [0, 1], sizes = [4, 1], strides = [1, 1]} : vector<4x4xf32> to vector<4x1xf32>
    %104 = vector.extract_strided_slice %97 {offsets = [1, 0], sizes = [1, 64], strides = [1, 1]} : vector<4x64xf32> to vector<1x64xf32>
    %105 = vector.broadcast %103 : vector<4x1xf32> to vector<4x64xf32>
    %106 = vector.broadcast %104 : vector<1x64xf32> to vector<4x64xf32>
    %107 = arith.mulf %105, %106 : vector<4x64xf32>
    %108 = arith.addf %102, %107 : vector<4x64xf32>
    %109 = vector.extract_strided_slice %0 {offsets = [0, 2], sizes = [4, 1], strides = [1, 1]} : vector<4x4xf32> to vector<4x1xf32>
    %110 = vector.extract_strided_slice %97 {offsets = [2, 0], sizes = [1, 64], strides = [1, 1]} : vector<4x64xf32> to vector<1x64xf32>
    %111 = vector.broadcast %109 : vector<4x1xf32> to vector<4x64xf32>
    %112 = vector.broadcast %110 : vector<1x64xf32> to vector<4x64xf32>
    %113 = arith.mulf %111, %112 : vector<4x64xf32>
    %114 = arith.addf %108, %113 : vector<4x64xf32>
    %115 = vector.extract_strided_slice %0 {offsets = [0, 3], sizes = [4, 1], strides = [1, 1]} : vector<4x4xf32> to vector<4x1xf32>
    %116 = vector.extract_strided_slice %97 {offsets = [3, 0], sizes = [1, 64], strides = [1, 1]} : vector<4x64xf32> to vector<1x64xf32>
    %117 = vector.broadcast %115 : vector<4x1xf32> to vector<4x64xf32>
    %118 = vector.broadcast %116 : vector<1x64xf32> to vector<4x64xf32>
    %119 = arith.mulf %117, %118 : vector<4x64xf32>
    %120 = arith.addf %114, %119 : vector<4x64xf32>
    %121 = vector.broadcast %1 : vector<4x1xf32> to vector<4x64xf32>
    %122 = arith.mulf %120, %121 : vector<4x64xf32>
    %123 = vector.broadcast %2 : vector<4x1xf32> to vector<4x64xf32>
    %124 = arith.addf %122, %123 : vector<4x64xf32>
    %cst_9 = arith.constant 0.000000e+00 : f32
    %125 = vector.broadcast %cst_9 : f32 to vector<4x64xf32>
    %126 = arith.maximumf %124, %125 : vector<4x64xf32>
    %127 = arith.addf %96, %126 : vector<4x64xf32>
    %cst_10 = arith.constant 2.500000e-01 : f32
    %128 = vector.broadcast %cst_10 : f32 to vector<4x64xf32>
    %129 = arith.mulf %127, %128 : vector<4x64xf32>
    %c0_11 = arith.constant 0 : index
    %c0_12 = arith.constant 0 : index
    %130 = vector.load %arg5[%c0_11, %c0_12] : memref<4x4xf32, #tpu.memory_space<vmem>>, vector<4x4xf32>
    %131 = vector.extract_strided_slice %130 {offsets = [0, 0], sizes = [4, 1], strides = [1, 1]} : vector<4x4xf32> to vector<4x1xf32>
    %132 = vector.extract_strided_slice %129 {offsets = [0, 0], sizes = [1, 64], strides = [1, 1]} : vector<4x64xf32> to vector<1x64xf32>
    %133 = vector.broadcast %131 : vector<4x1xf32> to vector<4x64xf32>
    %134 = vector.broadcast %132 : vector<1x64xf32> to vector<4x64xf32>
    %135 = arith.mulf %133, %134 : vector<4x64xf32>
    %136 = vector.extract_strided_slice %130 {offsets = [0, 1], sizes = [4, 1], strides = [1, 1]} : vector<4x4xf32> to vector<4x1xf32>
    %137 = vector.extract_strided_slice %129 {offsets = [1, 0], sizes = [1, 64], strides = [1, 1]} : vector<4x64xf32> to vector<1x64xf32>
    %138 = vector.broadcast %136 : vector<4x1xf32> to vector<4x64xf32>
    %139 = vector.broadcast %137 : vector<1x64xf32> to vector<4x64xf32>
    %140 = arith.mulf %138, %139 : vector<4x64xf32>
    %141 = arith.addf %135, %140 : vector<4x64xf32>
    %142 = vector.extract_strided_slice %130 {offsets = [0, 2], sizes = [4, 1], strides = [1, 1]} : vector<4x4xf32> to vector<4x1xf32>
    %143 = vector.extract_strided_slice %129 {offsets = [2, 0], sizes = [1, 64], strides = [1, 1]} : vector<4x64xf32> to vector<1x64xf32>
    %144 = vector.broadcast %142 : vector<4x1xf32> to vector<4x64xf32>
    %145 = vector.broadcast %143 : vector<1x64xf32> to vector<4x64xf32>
    %146 = arith.mulf %144, %145 : vector<4x64xf32>
    %147 = arith.addf %141, %146 : vector<4x64xf32>
    %148 = vector.extract_strided_slice %130 {offsets = [0, 3], sizes = [4, 1], strides = [1, 1]} : vector<4x4xf32> to vector<4x1xf32>
    %149 = vector.extract_strided_slice %129 {offsets = [3, 0], sizes = [1, 64], strides = [1, 1]} : vector<4x64xf32> to vector<1x64xf32>
    %150 = vector.broadcast %148 : vector<4x1xf32> to vector<4x64xf32>
    %151 = vector.broadcast %149 : vector<1x64xf32> to vector<4x64xf32>
    %152 = arith.mulf %150, %151 : vector<4x64xf32>
    %153 = arith.addf %147, %152 : vector<4x64xf32>
    %c0_13 = arith.constant 0 : index
    %c0_14 = arith.constant 0 : index
    %c0_15 = arith.constant 0 : index
    %154 = vector.load %arg6[%c0_13, %c0_14, %c0_15] : memref<1x4x64xf32, #tpu.memory_space<vmem>>, vector<1x4x64xf32>
    %155 = vector.shape_cast %154 : vector<1x4x64xf32> to vector<4x64xf32>
    %156 = vector.shape_cast %153 : vector<4x64xf32> to vector<1x4x64xf32>
    tpu.vector_store %arg6[%c0_13, %c0_14, %c0_15], %156 {strides = array<i32>} : memref<1x4x64xf32, #tpu.memory_space<vmem>>, vector<1x4x64xf32>,
    %cst_16 = arith.constant dense<0.000000e+00> : vector<4xf32>
    %157 = vector.multi_reduction <add>, %153, %cst_16 [1] : vector<4x64xf32> to vector<4xf32>
    %158 = vector.shape_cast %157 : vector<4xf32> to vector<4x1xf32>
    %159 = arith.mulf %153, %153 : vector<4x64xf32>
    %cst_17 = arith.constant dense<0.000000e+00> : vector<4xf32>
    %160 = vector.multi_reduction <add>, %159, %cst_17 [1] : vector<4x64xf32> to vector<4xf32>
    %161 = vector.shape_cast %160 : vector<4xf32> to vector<4x1xf32>
    %162 = tpu.concatenate %158, %161 in 1 : vector<4x1xf32>, vector<4x1xf32> -> vector<4x2xf32>
    %c0_18 = arith.constant 0 : index
    %c0_19 = arith.constant 0 : index
    %c0_20 = arith.constant 0 : index
    %c0_21 = arith.constant 0 : index
    %163 = vector.load %arg7[%c0_18, %c0_19, %c0_20, %c0_21] : memref<1x1x4x2xf32, #tpu.memory_space<vmem>>, vector<1x1x4x2xf32>
    %164 = vector.shape_cast %163 : vector<1x1x4x2xf32> to vector<4x2xf32>
    %165 = vector.shape_cast %162 : vector<4x2xf32> to vector<1x1x4x2xf32>
    tpu.vector_store %arg7[%c0_18, %c0_19, %c0_20, %c0_21], %165 {strides = array<i32>} : memref<1x1x4x2xf32, #tpu.memory_space<vmem>>, vector<1x1x4x2xf32>,
    return
  }
  func.func @transform_0(%arg0: i32, %arg1: i32) -> (i32, i32, i32) {
    %c0_i32 = arith.constant 0 : i32
    %c0_i32_0 = arith.constant 0 : i32
    return %arg0, %c0_i32, %arg1 : i32, i32, i32
  }
  func.func @transform_1(%arg0: i32, %arg1: i32) -> (i32, i32) {
    %c0_i32 = arith.constant 0 : i32
    %c0_i32_0 = arith.constant 0 : i32
    %c0_i32_1 = arith.constant 0 : i32
    return %c0_i32, %c0_i32_0 : i32, i32
  }
  func.func @transform_2(%arg0: i32, %arg1: i32) -> (i32, i32) {
    %c0_i32 = arith.constant 0 : i32
    %c0_i32_0 = arith.constant 0 : i32
    %c0_i32_1 = arith.constant 0 : i32
    return %c0_i32, %c0_i32_0 : i32, i32
  }
  func.func @transform_3(%arg0: i32, %arg1: i32) -> (i32, i32) {
    %c0_i32 = arith.constant 0 : i32
    %c0_i32_0 = arith.constant 0 : i32
    %c0_i32_1 = arith.constant 0 : i32
    return %c0_i32, %c0_i32_0 : i32, i32
  }
  func.func @transform_4(%arg0: i32, %arg1: i32) -> (i32, i32, i32) {
    %c0_i32 = arith.constant 0 : i32
    %c0_i32_0 = arith.constant 0 : i32
    return %arg0, %c0_i32, %arg1 : i32, i32, i32
  }
  func.func @transform_5(%arg0: i32, %arg1: i32) -> (i32, i32, i32, i32) {
    %c0_i32 = arith.constant 0 : i32
    %c0_i32_0 = arith.constant 0 : i32
    %c0_i32_1 = arith.constant 0 : i32
    return %arg0, %arg1, %c0_i32, %c0_i32_0 : i32, i32, i32, i32
  }
}

module attributes {stable_mosaic.version = 11 : i64} {
  func.func @_bn1_stats_kernel(%arg0: i32, %arg1: i32, %arg2: memref<1x4x256xf32, #tpu.memory_space<vmem>>, %arg3: memref<4x4xf32, #tpu.memory_space<vmem>>, %arg4: memref<1x1x4x2xf32, #tpu.memory_space<vmem>>) attributes {dimension_semantics = [#tpu.dimension_semantics<parallel>, #tpu.dimension_semantics<parallel>], iteration_bounds = array<i64: 2, 1>, scalar_prefetch = 0 : i64, scratch_operands = 0 : i64, tpu.core_type = #tpu.core_type<tc>, window_params = [{transform_indices = @transform_0, window_bounds = array<i64: 1, 4, 256>}, {pipeline_mode = #tpu.pipeline_mode<synchronous>, transform_indices = @transform_1, window_bounds = array<i64: 4, 4>}, {transform_indices = @transform_2, window_bounds = array<i64: 1, 1, 4, 2>}]} {
    %c0 = arith.constant 0 : index
    %c0_0 = arith.constant 0 : index
    %0 = vector.load %arg3[%c0, %c0_0] : memref<4x4xf32, #tpu.memory_space<vmem>>, vector<4x4xf32>
    %c0_1 = arith.constant 0 : index
    %c0_2 = arith.constant 0 : index
    %c0_3 = arith.constant 0 : index
    %1 = vector.load %arg2[%c0_1, %c0_2, %c0_3] : memref<1x4x256xf32, #tpu.memory_space<vmem>>, vector<1x4x256xf32>
    %2 = vector.shape_cast %1 : vector<1x4x256xf32> to vector<4x256xf32>
    %3 = vector.extract_strided_slice %0 {offsets = [0, 0], sizes = [4, 1], strides = [1, 1]} : vector<4x4xf32> to vector<4x1xf32>
    %4 = vector.extract_strided_slice %2 {offsets = [0, 0], sizes = [1, 256], strides = [1, 1]} : vector<4x256xf32> to vector<1x256xf32>
    %5 = vector.broadcast %3 : vector<4x1xf32> to vector<4x256xf32>
    %6 = vector.broadcast %4 : vector<1x256xf32> to vector<4x256xf32>
    %7 = arith.mulf %5, %6 : vector<4x256xf32>
    %8 = vector.extract_strided_slice %0 {offsets = [0, 1], sizes = [4, 1], strides = [1, 1]} : vector<4x4xf32> to vector<4x1xf32>
    %9 = vector.extract_strided_slice %2 {offsets = [1, 0], sizes = [1, 256], strides = [1, 1]} : vector<4x256xf32> to vector<1x256xf32>
    %10 = vector.broadcast %8 : vector<4x1xf32> to vector<4x256xf32>
    %11 = vector.broadcast %9 : vector<1x256xf32> to vector<4x256xf32>
    %12 = arith.mulf %10, %11 : vector<4x256xf32>
    %13 = arith.addf %7, %12 : vector<4x256xf32>
    %14 = vector.extract_strided_slice %0 {offsets = [0, 2], sizes = [4, 1], strides = [1, 1]} : vector<4x4xf32> to vector<4x1xf32>
    %15 = vector.extract_strided_slice %2 {offsets = [2, 0], sizes = [1, 256], strides = [1, 1]} : vector<4x256xf32> to vector<1x256xf32>
    %16 = vector.broadcast %14 : vector<4x1xf32> to vector<4x256xf32>
    %17 = vector.broadcast %15 : vector<1x256xf32> to vector<4x256xf32>
    %18 = arith.mulf %16, %17 : vector<4x256xf32>
    %19 = arith.addf %13, %18 : vector<4x256xf32>
    %20 = vector.extract_strided_slice %0 {offsets = [0, 3], sizes = [4, 1], strides = [1, 1]} : vector<4x4xf32> to vector<4x1xf32>
    %21 = vector.extract_strided_slice %2 {offsets = [3, 0], sizes = [1, 256], strides = [1, 1]} : vector<4x256xf32> to vector<1x256xf32>
    %22 = vector.broadcast %20 : vector<4x1xf32> to vector<4x256xf32>
    %23 = vector.broadcast %21 : vector<1x256xf32> to vector<4x256xf32>
    %24 = arith.mulf %22, %23 : vector<4x256xf32>
    %25 = arith.addf %19, %24 : vector<4x256xf32>
    %cst = arith.constant dense<0.000000e+00> : vector<4xf32>
    %26 = vector.multi_reduction <add>, %25, %cst [1] : vector<4x256xf32> to vector<4xf32>
    %27 = vector.shape_cast %26 : vector<4xf32> to vector<4x1xf32>
    %28 = arith.mulf %25, %25 : vector<4x256xf32>
    %cst_4 = arith.constant dense<0.000000e+00> : vector<4xf32>
    %29 = vector.multi_reduction <add>, %28, %cst_4 [1] : vector<4x256xf32> to vector<4xf32>
    %30 = vector.shape_cast %29 : vector<4xf32> to vector<4x1xf32>
    %31 = tpu.concatenate %27, %30 in 1 : vector<4x1xf32>, vector<4x1xf32> -> vector<4x2xf32>
    %c0_5 = arith.constant 0 : index
    %c0_6 = arith.constant 0 : index
    %c0_7 = arith.constant 0 : index
    %c0_8 = arith.constant 0 : index
    %32 = vector.load %arg4[%c0_5, %c0_6, %c0_7, %c0_8] : memref<1x1x4x2xf32, #tpu.memory_space<vmem>>, vector<1x1x4x2xf32>
    %33 = vector.shape_cast %32 : vector<1x1x4x2xf32> to vector<4x2xf32>
    %34 = vector.shape_cast %31 : vector<4x2xf32> to vector<1x1x4x2xf32>
    tpu.vector_store %arg4[%c0_5, %c0_6, %c0_7, %c0_8], %34 {strides = array<i32>} : memref<1x1x4x2xf32, #tpu.memory_space<vmem>>, vector<1x1x4x2xf32>,
    return
  }
  func.func @transform_0(%arg0: i32, %arg1: i32) -> (i32, i32, i32) {
    %c0_i32 = arith.constant 0 : i32
    %c0_i32_0 = arith.constant 0 : i32
    return %arg0, %c0_i32, %arg1 : i32, i32, i32
  }
  func.func @transform_1(%arg0: i32, %arg1: i32) -> (i32, i32) {
    %c0_i32 = arith.constant 0 : i32
    %c0_i32_0 = arith.constant 0 : i32
    %c0_i32_1 = arith.constant 0 : i32
    return %c0_i32, %c0_i32_0 : i32, i32
  }
  func.func @transform_2(%arg0: i32, %arg1: i32) -> (i32, i32, i32, i32) {
    %c0_i32 = arith.constant 0 : i32
    %c0_i32_0 = arith.constant 0 : i32
    %c0_i32_1 = arith.constant 0 : i32
    return %arg0, %arg1, %c0_i32, %c0_i32_0 : i32, i32, i32, i32
  }
}

module attributes {stable_mosaic.version = 11 : i64} {
  func.func @_bn2_apply_kernel(%arg0: i32, %arg1: i32, %arg2: memref<1x4x64xf32, #tpu.memory_space<vmem>>, %arg3: memref<4x2xf32, #tpu.memory_space<vmem>>, %arg4: memref<1x4x64xf32, #tpu.memory_space<vmem>>) attributes {dimension_semantics = [#tpu.dimension_semantics<parallel>, #tpu.dimension_semantics<parallel>], iteration_bounds = array<i64: 2, 1>, scalar_prefetch = 0 : i64, scratch_operands = 0 : i64, tpu.core_type = #tpu.core_type<tc>, window_params = [{transform_indices = @transform_0, window_bounds = array<i64: 1, 4, 64>}, {pipeline_mode = #tpu.pipeline_mode<synchronous>, transform_indices = @transform_1, window_bounds = array<i64: 4, 2>}, {transform_indices = @transform_2, window_bounds = array<i64: 1, 4, 64>}]} {
    %c0 = arith.constant 0 : index
    %c0_0 = arith.constant 0 : index
    %c0_1 = arith.constant 0 : index
    %0 = vector.load %arg2[%c0, %c0_0, %c0_1] : memref<1x4x64xf32, #tpu.memory_space<vmem>>, vector<1x4x64xf32>
    %1 = vector.shape_cast %0 : vector<1x4x64xf32> to vector<4x64xf32>
    %c0_2 = arith.constant 0 : index
    %c0_3 = arith.constant 0 : index
    %2 = vector.load %arg3[%c0_2, %c0_3] : memref<4x2xf32, #tpu.memory_space<vmem>>, vector<4x1xf32>
    %3 = vector.broadcast %2 : vector<4x1xf32> to vector<4x64xf32>
    %4 = arith.mulf %1, %3 : vector<4x64xf32>
    %c0_4 = arith.constant 0 : index
    %c1 = arith.constant 1 : index
    %5 = vector.load %arg3[%c0_4, %c1] : memref<4x2xf32, #tpu.memory_space<vmem>>, vector<4x1xf32>
    %6 = vector.broadcast %5 : vector<4x1xf32> to vector<4x64xf32>
    %7 = arith.addf %4, %6 : vector<4x64xf32>
    %c0_5 = arith.constant 0 : index
    %c0_6 = arith.constant 0 : index
    %c0_7 = arith.constant 0 : index
    %8 = vector.load %arg4[%c0_5, %c0_6, %c0_7] : memref<1x4x64xf32, #tpu.memory_space<vmem>>, vector<1x4x64xf32>
    %9 = vector.shape_cast %8 : vector<1x4x64xf32> to vector<4x64xf32>
    %10 = vector.shape_cast %7 : vector<4x64xf32> to vector<1x4x64xf32>
    tpu.vector_store %arg4[%c0_5, %c0_6, %c0_7], %10 {strides = array<i32>} : memref<1x4x64xf32, #tpu.memory_space<vmem>>, vector<1x4x64xf32>,
    return
  }
  func.func @transform_0(%arg0: i32, %arg1: i32) -> (i32, i32, i32) {
    %c0_i32 = arith.constant 0 : i32
    %c0_i32_0 = arith.constant 0 : i32
    return %arg0, %c0_i32, %arg1 : i32, i32, i32
  }
  func.func @transform_1(%arg0: i32, %arg1: i32) -> (i32, i32) {
    %c0_i32 = arith.constant 0 : i32
    %c0_i32_0 = arith.constant 0 : i32
    %c0_i32_1 = arith.constant 0 : i32
    return %c0_i32, %c0_i32_0 : i32, i32
  }
  func.func @transform_2(%arg0: i32, %arg1: i32) -> (i32, i32, i32) {
    %c0_i32 = arith.constant 0 : i32
    %c0_i32_0 = arith.constant 0 : i32
    return %arg0, %c0_i32, %arg1 : i32, i32, i32
  }
}

</mosaic_0001>

<bundles_post_ra>
// kernel: ibpool_forward.5
= control target key start
LH: loop header
LB: loop body
LE: loop exit
PB: predicated region body
PF: predicated region fallthrough
CT: control target
= control target key end

     0   :  { %s337_s9 = smov 0   ;;  %s339_s10 = smov 0   ;;  %s370_s0 = inlined_call_operand.vmem [shape: f32[2,4,64], index: 0, kind: input, shape index: {}]   ;;  %s371_s1 = inlined_call_operand.vmem [shape: f32[4,2], index: 1, kind: input, shape index: {}]   ;;  %s372_s2 = inlined_call_operand.vmem [shape: f32[2,4,64], index: 2, kind: output, shape index: {}]  }
   0x1   :  { %s341_s11 = smov 0  }
   0x2 LB: > { %s24_s12 = sadd.s32 1, %s314_s10  ;;  %p263_p0 = scmp.ge.s32.totalorder %s318_s11, 1  ;;  %s318_s11 = sphi %s341_s11, %s12_s11   ;;  %s314_s10 = sphi %s339_s10, %s374_s10   ;;  %s310_s9 = sphi %s337_s9, %s373_s9  }
   0x3   : > { %p26_p1 = scmp.ge.s32.totalorder %s24_s12, 2  ;;  %p130_p2 = scmp.lt.s32.totalorder %s318_s11, 3 }
   0x5   : > { %s376_s12 = smov (%p26_p1, %s24_s12), 0  ;;  %p131_p3 = pnand %p263_p0, %p130_p2 }
   0x6   : > { %p156_p4 = scmp.lt.s32.totalorder (!%p131_p3), %s310_s9, 1 }
   0x7   : > { %134 = sbr.rel (%p131_p3) target bundleno = 146 (0x92), region = 28 }
   0xc   : > { %v171_v0 = vld [vmem:[%s371_s1] sm:$0xf]  ;;  %v320_v1 = vmov 0   ;;  %v321_v2 = vmov 1   ;;  %s378_s9 = smov (!%p156_p4, %s310_s9), 1  ;;  %vm183_vm0 = vcmask 519168  }
   0xd   : > { %294 = vset.pattern.permute.xlu0 %v320_v1  ;;  %s264_s15 = sshll.u32 %s378_s9, 2 }
   0xe   : > { %174 = vperm.xlu0 %294, %v171_v0   ;;  %s162_s18 = scalar_lea.vmem %s370_s0, %s264_s15  ;;  %s169_s21 = scalar_lea.vmem %s372_s2, %s264_s15 }
   0xf   : > { %v170_v4 = vld [vmem:[%s162_s18] sm:$0xf] }
  0x12   : > { %295 = vset.pattern.permute.xlu0 %v321_v2 }
  0x13   : > { %179 = vperm.xlu0 %295, %v171_v0  }
  0x89   : > { %v175_v3 = vpop.permute.xlu0 %174 }
  0x8a   : > { %v177_v5 = vmul.f32 %v175_v3, %v170_v4 }
  0x8e   : > { %v180_v6 = vpop.permute.xlu0 %179 }
  0x8f   : > { %v182_v7 = vadd.f32 %v180_v6, %v177_v5 }
  0x91   : > { %184 = vst.msk [vmem:[%s169_s21] sm:$0xf] %vm183_vm0, %v182_v7 }
  0x92 PF: > { %s12_s11 = sadd.s32 1, %s318_s11   ;;  %s373_s9 = smov %s314_s10 }
  0x93   : > { %p9_p5 = scmp.ge.s32.totalorder %s12_s11, 4   ;;  %s374_s10 = smov %s376_s12 }
  0x95   :  { %11 = sbr.rel (!%p9_p5) target bundleno = 2 (0x2), region = 58 }

// kernel: ibpool_forward.3
= control target key start
LH: loop header
LB: loop body
LE: loop exit
PB: predicated region body
PF: predicated region fallthrough
CT: control target
= control target key end

     0   :  { %s465_s9 = smov 0   ;;  %s467_s10 = smov 0   ;;  %s505_s0 = inlined_call_operand.vmem [shape: f32[2,4,256], index: 0, kind: input, shape index: {}]   ;;  %s506_s1 = inlined_call_operand.vmem [shape: f32[4,4], index: 1, kind: input, shape index: {}]   ;;  %s507_s2 = inlined_call_operand.vmem [shape: f32[2,1,4,2], index: 2, kind: output, shape index: {}]  }
   0x1   :  { %s469_s11 = smov 0  }
   0x2 LB: > { %s24_s12 = sadd.s32 1, %s440_s10  ;;  %p382_p0 = scmp.ge.s32.totalorder %s444_s11, 1  ;;  %s444_s11 = sphi %s469_s11, %s12_s11   ;;  %s440_s10 = sphi %s467_s10, %s509_s10   ;;  %s436_s9 = sphi %s465_s9, %s508_s9  }
   0x3   : > { %p26_p1 = scmp.ge.s32.totalorder %s24_s12, 2  ;;  %p133_p2 = scmp.lt.s32.totalorder %s444_s11, 3 }
   0x5   : > { %s511_s12 = smov (%p26_p1, %s24_s12), 0  ;;  %p134_p3 = pnand %p382_p0, %p133_p2 }
   0x6   : > { %p162_p4 = scmp.lt.s32.totalorder (!%p134_p3), %s436_s9, 1 }
   0x7   : > { %137 = sbr.rel (%p134_p3) target bundleno = 296 (0x128), region = 28 }
   0xc   : > { %v178_v0 = vld [vmem:[%s506_s1] sm:$0xf]  ;;  %v446_v1 = vmov 0   ;;  %v447_v2 = vmov 2   ;;  %v448_v3 = vmov 1   ;;  %v449_v4 = vmov 3  }
   0xd   : > { %417 = vset.pattern.permute.xlu0 %v446_v1  ;;  %419 = vset.pattern.permute.xlu1 %v447_v2  ;;  %s513_s9 = smov (!%p162_p4, %s436_s9), 1  ;;  %v186_v5 = vlaneseq  ;;  %vm284_vm0 = vcmask 1043456   ;;  %vm297_vm1 = vcmask 7168   ;;  %vm299_vm2 = vcmask 11264  }
   0xe   : > { %182 = vperm.xlu0 %417, %v178_v0   ;;  %233 = vperm.xlu1 %419, %v178_v0   ;;  %s388_s15 = sshll.u32 %s513_s9, 3  ;;  %s385_s19 = sshll.u32 %s513_s9, 2 }
   0xf   : > { %v187_v6 = vshrl.u32 %v186_v5, 7  ;;  %s169_s18 = scalar_lea.vmem %s505_s0, %s388_s15  ;;  %s177_s22 = scalar_lea.vmem %s507_s2, %s385_s19 }
  0x10   : > { %v179_v11 = vld [vmem:[%s169_s18] sm:$0xff] }
  0x11   : > { %v188_v7 = vsub.s32 0, %v187_v6  ;;  %v192_v8 = vsub.s32 4, %v187_v6  ;;  %v212_v9 = vsub.s32 1, %v187_v6  ;;  %v216_v10 = vsub.s32 5, %v187_v6 }
  0x12   : > { %418 = vset.pattern.permute.xlu0 %v448_v3  ;;  %420 = vset.pattern.permute.xlu1 %v449_v4  ;;  %v238_v12 = vsub.s32 2, %v187_v6  ;;  %v242_v13 = vsub.s32 6, %v187_v6  ;;  %v264_v14 = vsub.s32 3, %v187_v6  ;;  %v268_v15 = vsub.s32 7, %v187_v6 }
  0x13   : > { %207 = vperm.xlu0 %418, %v178_v0   ;;  %259 = vperm.xlu1 %420, %v178_v0   ;;  %v189_v16 = vrot.slane %v179_v11, %v188_v7  ;;  %v193_v17 = vrot.slane %v179_v11, %v192_v8  ;;  %v213_v18 = vrot.slane %v179_v11, %v212_v9 }
  0x14   : > { %v217_v19 = vrot.slane %v179_v11, %v216_v10  ;;  %v239_v20 = vrot.slane %v179_v11, %v238_v12  ;;  %v243_v21 = vrot.slane %v179_v11, %v242_v13  ;;  %v265_v24 = vrot.slane %v179_v11, %v264_v14 }
  0x15   : > { %v269_v25 = vrot.slane %v179_v11, %v268_v15  ;;  %v199_v26 = vrot.slane %v189_v16, %v188_v7  ;;  %v203_v27 = vrot.slane %v193_v17, %v188_v7  ;;  %v223_v28 = vrot.slane %v213_v18, %v212_v9 }
  0x16   : > { %v227_v29 = vrot.slane %v217_v19, %v212_v9  ;;  %v249_v30 = vrot.slane %v239_v20, %v238_v12  ;;  %v253_v31 = vrot.slane %v243_v21, %v238_v12  ;;  %v275_v32 = vrot.slane %v265_v24, %v264_v14 }
  0x17   : > { %421 = vset.pattern.permute.xlu0 %v449_v4  ;;  %v279_v33 = vrot.slane %v269_v25, %v264_v14 }
  0x89   : > { %v183_v22 = vpop.permute.xlu0 %182  ;;  %v234_v23 = vpop.permute.xlu1 %233 }
  0x8a   : > { %v204_v36 = vmul.f32 %v199_v26, %v183_v22  ;;  %v205_v37 = vmul.f32 %v203_v27, %v183_v22  ;;  %v254_v40 = vmul.f32 %v249_v30, %v234_v23  ;;  %v255_v41 = vmul.f32 %v253_v31, %v234_v23 }
  0x8e   : > { %v208_v34 = vpop.permute.xlu0 %207  ;;  %v260_v35 = vpop.permute.xlu1 %259 }
  0x8f   : > { %v228_v38 = vmul.f32 %v223_v28, %v208_v34  ;;  %v229_v39 = vmul.f32 %v227_v29, %v208_v34  ;;  %v280_v44 = vmul.f32 %v275_v32, %v260_v35  ;;  %v281_v45 = vmul.f32 %v279_v33, %v260_v35 }
  0x91   : > { %v230_v42 = vadd.f32 %v228_v38, %v204_v36  ;;  %v231_v43 = vadd.f32 %v229_v39, %v205_v37 }
  0x93   : > { %v256_v46 = vadd.f32 %v254_v40, %v230_v42  ;;  %v257_v47 = vadd.f32 %v255_v41, %v231_v43 }
  0x95   : > { %v282_v48 = vadd.f32 %v280_v44, %v256_v46  ;;  %v283_v49 = vadd.f32 %v281_v45, %v257_v47 }
  0x97   : > { %v285_v50 = vsel %vm284_vm0, %v282_v48, 0.0  ;;  %v286_v51 = vsel %vm284_vm0, %v283_v49, 0.0  ;;  %v290_v52 = vmul.f32 %v282_v48, %v282_v48  ;;  %v291_v53 = vmul.f32 %v283_v49, %v283_v49 }
  0x98   : > { %v287_v54 = vadd.f32 %v286_v51, %v285_v50 }
  0x99   : > { %v292_v55 = vsel %vm284_vm0, %v290_v52, 0.0  ;;  %v293_v56 = vsel %vm284_vm0, %v291_v53, 0.0 }
  0x9a   : > { %288 = vadd.xlane.f32.xlu1 %v287_v54  ;;  %v294_v57 = vadd.f32 %v293_v56, %v292_v55 }
  0x9c   : > { %295 = vadd.xlane.f32.xlu0 %v294_v57 }
 0x123   : > { %v289_v58 = vpop.xlane.xlu1 %288 }
 0x125   : > { %v296_v59 = vpop.xlane.xlu0 %295 }
 0x126   : > { %v298_v60 = vsel %vm297_vm1, %v289_v58, %v296_v59 }
 0x127   : > { %300 = vst.msk [vmem:[%s177_s22] sm:$0xf] %vm299_vm2, %v298_v60 }
 0x128 PF: > { %s12_s11 = sadd.s32 1, %s444_s11   ;;  %s508_s9 = smov %s440_s10 }
 0x129   : > { %p9_p5 = scmp.ge.s32.totalorder %s12_s11, 4   ;;  %s509_s10 = smov %s511_s12 }
 0x12b   :  { %11 = sbr.rel (!%p9_p5) target bundleno = 2 (0x2), region = 58 }

// kernel: ibpool_forward.4
= control target key start
LH: loop header
LB: loop body
LE: loop exit
PB: predicated region body
PF: predicated region fallthrough
CT: control target
= control target key end

     0   :  { %s688_s18 = smov 0   ;;  %s690_s19 = smov 0   ;;  %s761_s0 = inlined_call_operand.vmem [shape: f32[2,16,64], index: 0, kind: input, shape index: {}]   ;;  %s762_s1 = inlined_call_operand.vmem [shape: f32[4,4], index: 1, kind: input, shape index: {}]   ;;  %s763_s2 = inlined_call_operand.vmem [shape: f32[4,2], index: 2, kind: input, shape index: {}]   ;;  %s764_s3 = inlined_call_operand.vmem [shape: f32[4,4], index: 3, kind: input, shape index: {}]   ;;  %s765_s4 = inlined_call_operand.vmem [shape: f32[2,4,64], index: 4, kind: output, shape index: {0}]   ;;  %s766_s5 = inlined_call_operand.vmem [shape: f32[2,1,4,2], index: 5, kind: output, shape index: {1}]  }
   0x1   :  { %s692_s20 = smov 0  }
   0x2 LB: > { %s28_s21 = sadd.s32 1, %s648_s19  ;;  %p587_p0 = scmp.ge.s32.totalorder %s652_s20, 1  ;;  %s652_s20 = sphi %s692_s20, %s16_s20   ;;  %s648_s19 = sphi %s690_s19, %s768_s19   ;;  %s644_s18 = sphi %s688_s18, %s767_s18  }
   0x3   : > { %p30_p1 = scmp.ge.s32.totalorder %s28_s21, 2  ;;  %p211_p2 = scmp.lt.s32.totalorder %s652_s20, 3 }
   0x5   : > { %s770_s21 = smov (%p30_p1, %s28_s21), 0  ;;  %p212_p3 = pnand %p587_p0, %p211_p2 }
   0x6   : > { %p251_p4 = scmp.lt.s32.totalorder (!%p212_p3), %s644_s18, 1 }
   0x7   : > { %215 = sbr.rel (%p212_p3) target bundleno = 318 (0x13e), region = 36 }
   0xc   : > { %v273_v0 = vld [vmem:[%s762_s1] sm:$0xf]  ;;  %v654_v1 = vmov 2   ;;  %v655_v2 = vmov 0   ;;  %v656_v3 = vmov 3   ;;  %v657_v4 = vmov 1  }
   0xd   : > { %625 = vset.pattern.permute.xlu1 %v654_v1  ;;  %623 = vset.pattern.permute.xlu0 %v655_v2  ;;  %v274_v5 = vld [vmem:[%s763_s2] sm:$0xf]  ;;  %s772_s18 = smov (!%p251_p4, %s644_s18), 1  ;;  %v282_v7 = vlaneseq  ;;  %vm452_vm0 = vcmask 519168   ;;  %vm461_vm1 = vcmask 7168   ;;  %vm463_vm2 = vcmask 11264  }
   0xe   : > { %298 = vperm.xlu1 %625, %v273_v0   ;;  %279 = vperm.xlu0 %623, %v273_v0   ;;  %v411_v6 = vld [vmem:[%s764_s3] sm:$0xf]  ;;  %s594_s28 = sshll.u32 %s772_s18, 4  ;;  %s590_s7 = sshll.u32 %s772_s18, 2 }
   0xf   : > { %v283_v8 = vshrl.u32 %v282_v7, 7  ;;  %s258_s6 = scalar_lea.vmem %s761_s0, %s594_s28  ;;  %s265_s10 = scalar_lea.vmem %s765_s4, %s590_s7 }
  0x10   : > { %v275_v11 = vld [vmem:[%s258_s6] sm:$0xff]  ;;  %v276_v12 = vld [vmem:[%s258_s6 + $0x8] sm:$0xff]  ;;  %s272_s13 = scalar_lea.vmem %s766_s5, %s590_s7 }
  0x11   : > { %v725_v9 = vsub.s32 0, %v283_v8  ;;  %v331_v10 = vsub.s32 4, %v283_v8  ;;  %v727_v13 = vsub.s32 2, %v283_v8  ;;  %v342_v14 = vsub.s32 6, %v283_v8 }
  0x12   : > { %626 = vset.pattern.permute.xlu1 %v656_v3  ;;  %624 = vset.pattern.permute.xlu0 %v657_v4  ;;  %v729_v15 = vsub.s32 1, %v283_v8  ;;  %v336_v16 = vsub.s32 5, %v283_v8  ;;  %v731_v17 = vsub.s32 3, %v283_v8  ;;  %v348_v18 = vsub.s32 7, %v283_v8 }
  0x13   : > { %308 = vperm.xlu1 %626, %v273_v0   ;;  %288 = vperm.xlu0 %624, %v273_v0   ;;  %v285_v20 = vrot.slane %v275_v11, %v725_v9  ;;  %v332_v21 = vrot.slane %v275_v11, %v331_v10  ;;  %v359_v22 = vrot.slane %v276_v12, %v725_v9 }
  0x14   : > { %v386_v23 = vrot.slane %v276_v12, %v331_v10  ;;  %v304_v25 = vrot.slane %v275_v11, %v727_v13  ;;  %v343_v26 = vrot.slane %v275_v11, %v342_v14  ;;  %v370_v27 = vrot.slane %v276_v12, %v727_v13 }
  0x15   : > { %v397_v28 = vrot.slane %v276_v12, %v342_v14  ;;  %v294_v29 = vrot.slane %v275_v11, %v729_v15  ;;  %v337_v30 = vrot.slane %v275_v11, %v336_v16  ;;  %v364_v31 = vrot.slane %v276_v12, %v729_v15 }
  0x16   : > { %v391_v32 = vrot.slane %v276_v12, %v336_v16  ;;  %v314_v33 = vrot.slane %v275_v11, %v731_v17  ;;  %v349_v34 = vrot.slane %v275_v11, %v348_v18  ;;  %v376_v35 = vrot.slane %v276_v12, %v731_v17 }
  0x17   : > { %627 = vset.pattern.permute.xlu1 %v655_v2  ;;  %324 = vperm.xlu0 %624, %v274_v5   ;;  %v403_v36 = vrot.slane %v276_v12, %v348_v18 }
  0x18   : > { %319 = vperm.xlu1 %627, %v274_v5  }
  0x1b   : > { %423 = vperm.xlu0 %624, %v411_v6  }
  0x1c   : > { %414 = vperm.xlu1 %627, %v411_v6  }
  0x1f   : > { %629 = vset.pattern.permute.xlu0 %v656_v3 }
  0x20   : > { %628 = vset.pattern.permute.xlu1 %v654_v1  ;;  %443 = vperm.xlu0 %629, %v411_v6  }
  0x21   : > { %433 = vperm.xlu1 %628, %v411_v6  }
  0x89   : > { %v280_v19 = vpop.permute.xlu0 %279  ;;  %v299_v24 = vpop.permute.xlu1 %298 }
  0x8a   : > { %v286_v37 = vmul.f32 %v285_v20, %v280_v19  ;;  %v333_v38 = vmul.f32 %v332_v21, %v280_v19  ;;  %v360_v39 = vmul.f32 %v359_v22, %v280_v19  ;;  %v387_v40 = vmul.f32 %v386_v23, %v280_v19 }
  0x8b   : > { %v305_v41 = vmul.f32 %v304_v25, %v299_v24  ;;  %v344_v42 = vmul.f32 %v343_v26, %v299_v24  ;;  %v371_v43 = vmul.f32 %v370_v27, %v299_v24  ;;  %v398_v44 = vmul.f32 %v397_v28, %v299_v24 }
  0x8e   : > { %v289_v45 = vpop.permute.xlu0 %288  ;;  %v309_v50 = vpop.permute.xlu1 %308 }
  0x8f   : > { %v295_v46 = vmul.f32 %v294_v29, %v289_v45  ;;  %v338_v47 = vmul.f32 %v337_v30, %v289_v45  ;;  %v365_v48 = vmul.f32 %v364_v31, %v289_v45  ;;  %v392_v49 = vmul.f32 %v391_v32, %v289_v45 }
  0x90   : > { %v315_v51 = vmul.f32 %v314_v33, %v309_v50  ;;  %v350_v52 = vmul.f32 %v349_v34, %v309_v50  ;;  %v377_v53 = vmul.f32 %v376_v35, %v309_v50  ;;  %v404_v54 = vmul.f32 %v403_v36, %v309_v50 }
  0x91   : > { %v296_v55 = vadd.f32 %v295_v46, %v286_v37  ;;  %v339_v56 = vadd.f32 %v338_v47, %v333_v38  ;;  %v366_v57 = vadd.f32 %v365_v48, %v360_v39  ;;  %v393_v58 = vadd.f32 %v392_v49, %v387_v40 }
  0x92   : > { %v325_v8 = vpop.permute.xlu0 %324 }
  0x93   : > { %v306_v59 = vadd.f32 %v305_v41, %v296_v55  ;;  %v345_v60 = vadd.f32 %v344_v42, %v339_v56  ;;  %v372_v61 = vadd.f32 %v371_v43, %v366_v57  ;;  %v399_v62 = vadd.f32 %v398_v44, %v393_v58  ;;  %v320_v3 = vpop.permute.xlu1 %319 }
  0x95   : > { %v316_v63 = vadd.f32 %v315_v51, %v306_v59  ;;  %v351_v0 = vadd.f32 %v350_v52, %v345_v60  ;;  %v378_v1 = vadd.f32 %v377_v53, %v372_v61  ;;  %v405_v2 = vadd.f32 %v404_v54, %v399_v62 }
  0x96   : > { %v424_v26 = vpop.permute.xlu0 %423 }
  0x97   : > { %v322_v4 = vmul.f32 %v320_v3, %v316_v63  ;;  %v352_v5 = vmul.f32 %v351_v0, %v320_v3  ;;  %v379_v6 = vmul.f32 %v378_v1, %v320_v3  ;;  %v406_v7 = vmul.f32 %v405_v2, %v320_v3  ;;  %v415_v24 = vpop.permute.xlu1 %414 }
  0x99   : > { %v327_v10 = vadd.f32 %v325_v8, %v322_v4  ;;  %v353_v11 = vadd.f32 %v352_v5, %v325_v8  ;;  %v380_v12 = vadd.f32 %v379_v6, %v325_v8  ;;  %v407_v18 = vadd.f32 %v406_v7, %v325_v8 }
  0x9b   : > { %v328_v14 = vmax.f32 %v327_v10, 0.0  ;;  %v354_v16 = vmax.f32 %v353_v11, 0.0  ;;  %v381_v20 = vmax.f32 %v380_v12, 0.0  ;;  %v408_v22 = vmax.f32 %v407_v18, 0.0  ;;  %v444_v34 = vpop.permute.xlu0 %443 }
  0x9c   : > { %v434_v30 = vpop.permute.xlu1 %433 }
  0x9d   : > { %v355_v19 = vadd.f32 %v354_v16, %v328_v14 }
  0x9f   : > { %v382_v21 = vadd.f32 %v381_v20, %v355_v19 }
  0xa1   : > { %v409_v23 = vadd.f32 %v408_v22, %v382_v21 }
  0xa3   : > { %v410_v25 = vmul.f32 0.25, %v409_v23 }
  0xa5   : > { %v429_v27 = vrot.slane %v410_v25, %v729_v15  ;;  %v420_v28 = vrot.slane %v410_v25, %v725_v9  ;;  %v439_v29 = vrot.slane %v410_v25, %v727_v13  ;;  %v449_v33 = vrot.slane %v410_v25, %v731_v17 }
  0xa7   : > { %v430_v31 = vmul.f32 %v429_v27, %v424_v26  ;;  %v421_v32 = vmul.f32 %v420_v28, %v415_v24  ;;  %v440_v36 = vmul.f32 %v439_v29, %v434_v30  ;;  %v450_v38 = vmul.f32 %v449_v33, %v444_v34 }
  0xa9   : > { %v431_v35 = vadd.f32 %v430_v31, %v421_v32 }
  0xab   : > { %v441_v37 = vadd.f32 %v440_v36, %v431_v35 }
  0xad   : > { %v451_v15 = vadd.f32 %v450_v38, %v441_v37 }
  0xaf   : > { %v454_v9 = vsel %vm452_vm0, %v451_v15, 0.0  ;;  %453 = vst.msk [vmem:[%s265_s10] sm:$0xf] %vm452_vm0, %v451_v15  ;;  %v457_v13 = vmul.f32 %v451_v15, %v451_v15 }
  0xb0   : > { %455 = vadd.xlane.f32.xlu1 %v454_v9 }
  0xb1   : > { %v458_v39 = vsel %vm452_vm0, %v457_v13, 0.0 }
  0xb2   : > { %459 = vadd.xlane.f32.xlu0 %v458_v39 }
 0x139   : > { %v456_v17 = vpop.xlane.xlu1 %455 }
 0x13b   : > { %v460_v40 = vpop.xlane.xlu0 %459 }
 0x13c   : > { %v462_v41 = vsel %vm461_vm1, %v456_v17, %v460_v40 }
 0x13d   : > { %464 = vst.msk [vmem:[%s272_s13] sm:$0xf] %vm463_vm2, %v462_v41 }
 0x13e PF: > { %s16_s20 = sadd.s32 1, %s652_s20   ;;  %s767_s18 = smov %s648_s19 }
 0x13f   : > { %p13_p5 = scmp.ge.s32.totalorder %s16_s20, 4   ;;  %s768_s19 = smov %s770_s21 }
 0x141   :  { %15 = sbr.rel (!%p13_p5) target bundleno = 2 (0x2), region = 78 }

</bundles_post_ra>
